<compile_context>
chip_gen: v7x
topology: tpu7x:2x2x1
jax: 0.10.0
libtpu: 0.0.40
codegen_flags: <defaults>
</compile_context>

<pallas_src>
import functools

import jax
import jax.numpy as jnp
from jax.experimental import pallas as pl
from jax.experimental.pallas import tpu as pltpu


# ----------------------------- kernels ------------------------------------


def _quant_dequant_kernel(x_ref, m_ref, o_ref):
    # outputs = round(inputs - means) + means  (torch.round == half-to-even,
    # matching jnp.round)
    x = x_ref[...]
    m = m_ref[...]
    o_ref[...] = jnp.round(x - m) + m


def _quant_dequant_nomean_kernel(x_ref, o_ref):
    # outputs = round(inputs)
    o_ref[...] = jnp.round(x_ref[...])


def _quant_symbols_kernel(x_ref, m_ref, o_ref):
    # outputs = round(inputs - means).int()
    # TODO(synk): could emit int16 symbols (half the write bandwidth) if the
    # downstream rANS coder accepts 16-bit symbols; kept int32 for fidelity.
    o_ref[...] = jnp.round(x_ref[...] - m_ref[...]).astype(jnp.int32)


def _quant_symbols_nomean_kernel(x_ref, o_ref):
    o_ref[...] = jnp.round(x_ref[...]).astype(jnp.int32)


def _dequant_kernel(s_ref, m_ref, o_ref):
    # outputs = symbols.type_as(means) + means
    o_ref[...] = s_ref[...].astype(o_ref.dtype) + m_ref[...]


def _dequant_nomean_kernel(s_ref, o_ref):
    # outputs = symbols.float()
    o_ref[...] = s_ref[...].astype(o_ref.dtype)


def _lower_bound_kernel(x_ref, o_ref, *, bound):
    # LowerBound forward: max(x, bound)
    o_ref[...] = jnp.maximum(x_ref[...], jnp.asarray(bound, x_ref.dtype))


# --------------------------- pallas wrappers -------------------------------

# Target ~2 MiB per operand block: big enough to amortize the ~0.35 us per-step
# overhead (~85%+ of HBM roofline), small enough that 2 in + 1 out double-
# buffered (~12 MiB) fits every generation's scoped VMEM budget.
_TARGET_BLOCK_BYTES = 2 * 1024 * 1024
_VMEM_LIMIT_BYTES = 32 * 1024 * 1024  # safe on v5e/v6e/v7x


def _plan_layout(total, itemsize):
    """Pick a lane-dense (rows, lanes) view of `total` elements.

    Prefers a lane width that divides `total` exactly (zero padding / no extra
    copy); falls back to padding up to an (8, 128)-aligned shape otherwise.
    Returns (rows, lanes, block_rows, pad_elems).
    """
    lanes = None
    for cand in (4096, 2048, 1024, 512, 256, 128):
        if total % cand == 0:
            lanes = cand
            rows = total // cand
            pad = 0
            break
    if lanes is None:
        lanes = 1024
        rows = pl.cdiv(total, lanes)
        rows = ((rows + 7) // 8) * 8  # keep the row count sublane-aligned
        pad = rows * lanes - total

    target_rows = max(8, _TARGET_BLOCK_BYTES // (lanes * itemsize))
    target_rows = (target_rows // 8) * 8  # multiple of 8 sublanes
    block_rows = min(target_rows, rows)   # == rows (full extent) for small inputs
    return rows, lanes, block_rows, pad


def _elementwise_call(kernel, out_dtype, shape, *arrays):
    """Run an element-wise kernel over same-shaped tensors, lane-dense tiled."""
    total = 1
    for d in shape:
        total *= int(d)
    itemsize = max(jnp.dtype(a.dtype).itemsize for a in arrays)
    rows, lanes, block_rows, pad = _plan_layout(total, itemsize)

    flats = []
    for a in arrays:
        f = a.reshape(-1)
        if pad:
            f = jnp.pad(f, (0, pad))
        flats.append(f.reshape(rows, lanes))

    grid = (pl.cdiv(rows, block_rows),)
    spec = pl.BlockSpec((block_rows, lanes), lambda i: (i, 0))

    bytes_in = sum(int(f.size) * jnp.dtype(f.dtype).itemsize for f in flats)
    bytes_out = rows * lanes * jnp.dtype(out_dtype).itemsize

    out = pl.pallas_call(
        kernel,
        out_shape=jax.ShapeDtypeStruct((rows, lanes), out_dtype),
        grid=grid,
        in_specs=[spec] * len(flats),
        out_specs=spec,
        compiler_params=pltpu.CompilerParams(
            dimension_semantics=("parallel",),
            vmem_limit_bytes=_VMEM_LIMIT_BYTES,
        ),
        cost_estimate=pl.CostEstimate(
            flops=2 * total,
            transcendentals=0,
            bytes_accessed=bytes_in + bytes_out,
        ),
    )(*flats)

    out = out.reshape(-1)
    if pad:
        out = out[:total]
    return out.reshape(shape)


# ------------------------------ module ------------------------------------


class EntropyModel:
    """JAX/Pallas port of the compute paths of DCVC EntropyModel."""

    def __init__(self, likelihood_bound=1e-9, entropy_coder_precision=16):
        self.entropy_coder_precision = int(entropy_coder_precision)
        self.use_likelihood_bound = likelihood_bound > 0
        self.likelihood_bound = float(likelihood_bound)
        # buffers (populated by update() in the original; left empty here)
        self._offset = jnp.zeros((0,), jnp.int32)
        self._quantized_cdf = jnp.zeros((0, 0), jnp.int32)
        self._cdf_length = jnp.zeros((0,), jnp.int32)

    # --- hot paths, implemented as Pallas kernels ---

    def quantize(self, inputs, mode, means=None):
        if mode not in ("dequantize", "symbols"):
            raise ValueError(f'Invalid quantization mode: "{mode}"')
        if mode == "dequantize":
            if means is None:
                return _elementwise_call(
                    _quant_dequant_nomean_kernel, inputs.dtype, inputs.shape, inputs
                )
            return _elementwise_call(
                _quant_dequant_kernel, inputs.dtype, inputs.shape, inputs, means
            )
        # mode == "symbols"
        if means is None:
            return _elementwise_call(
                _quant_symbols_nomean_kernel, jnp.int32, inputs.shape, inputs
            )
        return _elementwise_call(
            _quant_symbols_kernel, jnp.int32, inputs.shape, inputs, means
        )

    def dequantize(self, symbols, means=None):
        if means is None:
            return _elementwise_call(
                _dequant_nomean_kernel, jnp.float32, symbols.shape, symbols
            )
        return _elementwise_call(
            _dequant_kernel, means.dtype, symbols.shape, symbols, means
        )

    def apply_likelihood_lower_bound(self, likelihoods):
        if not self.use_likelihood_bound:
            return likelihoods
        return _elementwise_call(
            functools.partial(_lower_bound_kernel, bound=self.likelihood_bound),
            likelihoods.dtype,
            likelihoods.shape,
            likelihoods,
        )

    # --- host-side parts with no TPU-kernel equivalent ---

    def compress(self, inputs, indexes, means=None):
        symbols = self.quantize(inputs, "symbols", means)
        # TODO(synk): rANS encode_with_indexes is a host-side C++ entropy coder;
        # no Pallas equivalent.
        return symbols

    def decompress(self, symbols, means=None):
        # TODO(synk): rANS decode_with_indexes is a host-side C++ entropy coder;
        # here we only perform the tensor-side dequantization.
        return self.dequantize(symbols, means)

    # TODO(synk): _pmf_to_cdf / pmf_to_quantized_cdf depend on a C++ extension
    # (MLCodec_CXX) and produce ragged integer CDF tables; no Pallas equivalent.


# ------------------------------- main --------------------------------------


if __name__ == "__main__":
    key = jax.random.PRNGKey(0)
    k1, k2, k3, k4 = jax.random.split(key, 4)

    N, C, H, W = 2, 4, 16, 16
    x = jax.random.normal(k1, (N, C, H, W), jnp.float32) * 5.0
    means = jax.random.normal(k2, (N, C, H, W), jnp.float32)
    likelihoods = jnp.abs(jax.random.normal(k3, (N, C, H, W), jnp.float32)) * 1e-6

    model = EntropyModel(likelihood_bound=1e-9)

    # 'dequantize' mode: round(x - means) + means
    deq = model.quantize(x, "dequantize", means)
    ref_deq = jnp.round(x - means) + means

    # 'dequantize' mode without means: round(x)
    deq_nm = model.quantize(x, "dequantize", None)
    ref_deq_nm = jnp.round(x)

    # 'symbols' mode: round(x - means).int()
    sym = model.quantize(x, "symbols", means)
    ref_sym = jnp.round(x - means).astype(jnp.int32)

    # dequantize symbols back: symbols + means
    back = model.dequantize(sym, means)
    ref_back = ref_sym.astype(jnp.float32) + means

    # dequantize without means: symbols.float()
    back_nm = model.dequantize(sym, None)
    ref_back_nm = ref_sym.astype(jnp.float32)

    # likelihood lower bound: max(p, bound)
    lb = model.apply_likelihood_lower_bound(likelihoods)
    ref_lb = jnp.maximum(likelihoods, 1e-9)

    # non-128-divisible shape exercises the padded layout path
    x_odd = jax.random.normal(k4, (1, 3, 5, 7), jnp.float32) * 5.0
    sym_odd = model.quantize(x_odd, "symbols", None)
    ref_sym_odd = jnp.round(x_odd).astype(jnp.int32)

    jax.block_until_ready((deq, deq_nm, sym, back, back_nm, lb, sym_odd))

    assert deq.shape == (N, C, H, W) and deq.dtype == jnp.float32
    assert deq_nm.shape == (N, C, H, W) and deq_nm.dtype == jnp.float32
    assert sym.shape == (N, C, H, W) and sym.dtype == jnp.int32
    assert back.shape == (N, C, H, W) and back.dtype == jnp.float32
    assert back_nm.shape == (N, C, H, W) and back_nm.dtype == jnp.float32
    assert lb.shape == (N, C, H, W) and lb.dtype == jnp.float32
    assert sym_odd.shape == (1, 3, 5, 7) and sym_odd.dtype == jnp.int32

    assert jnp.allclose(deq, ref_deq, atol=1e-6)
    assert jnp.allclose(deq_nm, ref_deq_nm, atol=1e-6)
    assert jnp.array_equal(sym, ref_sym)
    assert jnp.allclose(back, ref_back, atol=1e-6)
    assert jnp.allclose(back_nm, ref_back_nm, atol=1e-6)
    assert jnp.allclose(lb, ref_lb, atol=0.0)
    assert jnp.array_equal(sym_odd, ref_sym_odd)

    print("KERNEL_OK")
</pallas_src>

<mosaic_0001>
module attributes {stable_mosaic.version = 11 : i64} {
  func.func @_quant_dequant_kernel(%arg0: i32, %arg1: memref<1x2048xf32, #tpu.memory_space<vmem>>, %arg2: memref<1x2048xf32, #tpu.memory_space<vmem>>, %arg3: memref<1x2048xf32, #tpu.memory_space<vmem>>) attributes {dimension_semantics = [#tpu.dimension_semantics<parallel>], iteration_bounds = array<i64: 1>, scalar_prefetch = 0 : i64, scratch_operands = 0 : i64, tpu.core_type = #tpu.core_type<tc>, window_params = [{transform_indices = @transform_0, window_bounds = array<i64: 1, 2048>}, {transform_indices = @transform_1, window_bounds = array<i64: 1, 2048>}, {transform_indices = @transform_2, window_bounds = array<i64: 1, 2048>}]} {
    %c0 = arith.constant 0 : index
    %c0_0 = arith.constant 0 : index
    %0 = vector.load %arg1[%c0, %c0_0] : memref<1x2048xf32, #tpu.memory_space<vmem>>, vector<1x2048xf32>
    %c0_1 = arith.constant 0 : index
    %c0_2 = arith.constant 0 : index
    %1 = vector.load %arg2[%c0_1, %c0_2] : memref<1x2048xf32, #tpu.memory_space<vmem>>, vector<1x2048xf32>
    %2 = arith.subf %0, %1 : vector<1x2048xf32>
    %3 = math.roundeven %2 : vector<1x2048xf32>
    %4 = arith.addf %3, %1 : vector<1x2048xf32>
    %c0_3 = arith.constant 0 : index
    %c0_4 = arith.constant 0 : index
    %5 = vector.load %arg3[%c0_3, %c0_4] : memref<1x2048xf32, #tpu.memory_space<vmem>>, vector<1x2048xf32>
    tpu.vector_store %arg3[%c0_3, %c0_4], %4 {strides = array<i32>} : memref<1x2048xf32, #tpu.memory_space<vmem>>, vector<1x2048xf32>,
    return
  }
  func.func @transform_0(%arg0: i32) -> (i32, i32) {
    %c0_i32 = arith.constant 0 : i32
    %c0_i32_0 = arith.constant 0 : i32
    return %arg0, %c0_i32 : i32, i32
  }
  func.func @transform_1(%arg0: i32) -> (i32, i32) {
    %c0_i32 = arith.constant 0 : i32
    %c0_i32_0 = arith.constant 0 : i32
    return %arg0, %c0_i32 : i32, i32
  }
  func.func @transform_2(%arg0: i32) -> (i32, i32) {
    %c0_i32 = arith.constant 0 : i32
    %c0_i32_0 = arith.constant 0 : i32
    return %arg0, %c0_i32 : i32, i32
  }
}

</mosaic_0001>

<bundles_post_ra>
// kernel: tpu_custom_call.1
= control target key start
LH: loop header
LB: loop body
LE: loop exit
PB: predicated region body
PF: predicated region fallthrough
CT: control target
= control target key end

     0   :  { %7 = vsyncpa [#allocation3], 0  ;;  %s195_s0 = inlined_call_operand.hbm [shape: f32[1,2048], index: 0, kind: input, shape index: {}]   ;;  %s196_s1 = inlined_call_operand.hbm [shape: f32[1,2048], index: 1, kind: input, shape index: {}]   ;;  %s197_s2 = inlined_call_operand.hbm [shape: f32[1,2048], index: 2, kind: output, shape index: {}]  }
   0x1   :  { %8 = vsyncpa [#allocation6], 0 }
   0x2   :  { %9 = vsyncpa [#allocation4], 0  ;;  %s141_s9 = smov [#allocation2]   ;;  %s142_s11 = smov [#allocation5]  }
   0x3   :  { %s16_s10 = sshll.u32 %s141_s9, 4  ;;  %s26_s12 = sshll.u32 %s142_s11, 4  ;;  %s17_s10 = int_to_ptr.vmem [resolvable:$true] %s16_s10  ;;  %s27_s12 = int_to_ptr.vmem [resolvable:$true] %s26_s12 }
   0x4   :  { %s69_s15 = scalar_lea.hbm %s195_s0, 256 }
   0x5   :  { %p70_p0 = scmp.ne.s32.totalorder %s195_s0, %s69_s15  ;;  %p73_p1 = scmp.lt.u32.totalorder %s69_s15, %s195_s0 }
   0x7   :  { %p75_p2 = pnand %p73_p1, %p70_p0 }
   0x9   :  { %78 = shalt.err (!%p75_p2)
}
   0xa   :  { %s79_s20 = scalar_lea.vmem %s17_s10, 256  ;;  %p84_p4 = scmp.lt.s32.totalorder %s17_s10, %s17_s10 }
   0xb   :  { %p80_p3 = scmp.ne.s32.totalorder %s17_s10, %s79_s20  ;;  %p85_p5 = scmp.lt.s32.totalorder %s79_s20, %s79_s20 }
   0xd   :  { %p86_p6 = por %p85_p5, %p84_p4 }
   0xf   :  { %p87_p7 = pnand %p86_p6, %p80_p3 }
  0x11   :  { %90 = shalt.err (!%p87_p7)
}
  0x12   :  { %19 = dma.hbm_to_vmem [thread:$0]  %s195_s0, 256, %s17_s10, [#allocation3]  }
  0x13   :  { %s91_s25 = scalar_lea.hbm %s196_s1, 256 }
  0x14   :  { %p92_p8 = scmp.ne.s32.totalorder %s196_s1, %s91_s25  ;;  %p95_p9 = scmp.lt.u32.totalorder %s91_s25, %s196_s1 }
  0x16   :  { %p97_p10 = pnand %p95_p9, %p92_p8 }
  0x18   :  { %100 = shalt.err (!%p97_p10)
}
  0x19   :  { %s101_s30 = scalar_lea.vmem %s27_s12, 256  ;;  %p106_p12 = scmp.lt.s32.totalorder %s27_s12, %s27_s12 }
  0x1a   :  { %p102_p11 = scmp.ne.s32.totalorder %s27_s12, %s101_s30  ;;  %p107_p13 = scmp.lt.s32.totalorder %s101_s30, %s101_s30 }
  0x1c   :  { %p108_p0 = por %p107_p13, %p106_p12 }
  0x1e   :  { %p109_p1 = pnand %p108_p0, %p102_p11 }
  0x20   :  { %112 = shalt.err (!%p109_p1)
}
  0x21   :  { %29 = dma.hbm_to_vmem [thread:$0]  %s196_s1, 256, %s27_s12, [#allocation6]  }
  0x22   :  { %135 = dma.done.wait [#allocation3], 256  }
  0x23   :  { %136 = vsyncadd [#allocation3], 4294967040 }
  0x24   :  { %137 = dma.done.wait [#allocation6], 256  }
  0x25   :  { %138 = vsyncadd [#allocation6], 4294967040  ;;  %v36_v0 = vld [vmem:[#allocation2] sm:$0xff]  ;;  %v38_v1 = vld [vmem:[#allocation5] sm:$0xff]  ;;  %s143_s4 = smov [#allocation7]  }
  0x26   :  { %v37_v2 = vld [vmem:[#allocation2 + $0x8] sm:$0xff]  ;;  %v40_v3 = vsub.f32 %v36_v0, %v38_v1  ;;  %v39_v4 = vld [vmem:[#allocation5 + $0x8] sm:$0xff]  ;;  %s54_s5 = sshll.u32 %s143_s4, 4  ;;  %s55_s5 = int_to_ptr.vmem [resolvable:$true] %s54_s5 }
  0x27   :  { %v41_v5 = vsub.f32 %v37_v2, %v39_v4  ;;  %s113_s1 = scalar_lea.vmem %s55_s5, 256  ;;  %p118_p3 = scmp.lt.s32.totalorder %s55_s5, %s55_s5 }
  0x28   :  { %v64_v6 = vround.rtne.f32 %v40_v3  ;;  %p114_p2 = scmp.ne.s32.totalorder %s55_s5, %s113_s1  ;;  %p119_p4 = scmp.lt.s32.totalorder %s113_s1, %s113_s1 }
  0x29   :  { %v65_v7 = vround.rtne.f32 %v41_v5 }
  0x2a   :  { %v44_v8 = vadd.f32 %v64_v6, %v38_v1  ;;  %p120_p5 = por %p119_p4, %p118_p3 }
  0x2b   :  { %v45_v9 = vadd.f32 %v65_v7, %v39_v4 }
  0x2c   :  { %46 = vst [vmem:[#allocation7] sm:$0xff] %v44_v8  ;;  %p121_p6 = pnand %p120_p5, %p114_p2 }
  0x2d   :  { %47 = vst [vmem:[#allocation7 + $0x8] sm:$0xff] %v45_v9 }
  0x2e   :  { %124 = shalt.err (!%p121_p6)
}
  0x2f   :  { %s125_s8 = scalar_lea.hbm %s197_s2, 256 }
  0x30   :  { %p126_p7 = scmp.ne.s32.totalorder %s197_s2, %s125_s8  ;;  %p129_p8 = scmp.lt.u32.totalorder %s125_s8, %s197_s2 }
  0x32   :  { %p131_p9 = pnand %p129_p8, %p126_p7 }
  0x34   :  { %134 = shalt.err (!%p131_p9)
}
  0x35   :  { %57 = dma.vmem_to_hbm [thread:$0]  %s55_s5, 256, %s197_s2, [#allocation4]  }
  0x36   :  { %139 = dma.done.wait [#allocation4], 256  }
  0x37   :  { %140 = vsyncadd [#allocation4], 4294967040 }
  0x38   :  { %61 = vsyncpa [#allocation3], 1 }
  0x39   :  { %62 = vsyncpa [#allocation6], 1 }
  0x3a   :  { %63 = vsyncpa [#allocation4], 1 }

</bundles_post_ra>
